<compile_context>
chip_gen: v7x
topology: tpu7x:2x2x1
jax: 0.10.0
libtpu: 0.0.40
codegen_flags: <defaults>
</compile_context>

<pallas_src>
import functools

import jax
import jax.numpy as jnp
from jax.experimental import pallas as pl
from jax.experimental.pallas import tpu as pltpu


def _cdiv(a, b):
    return -(-a // b)


def _round_up(x, m):
    return ((x + m - 1) // m) * m


def _infonce_kernel(x_ref, m_ref, part_ref, *, true_b, tile_b, n_inner):
    """One (tile_b, C) batch tile; accumulates per-row losses into part_ref.

    x_ref/m_ref : (tile_b, C) logits / multi-hot mask (any dtype, upcast here).
    part_ref    : (tile_b, 1) f32 per-split partial sums; resident across the
                  inner grid axis (its index_map ignores j) -> used as the
                  accumulator directly.
    """
    i = pl.program_id(0)
    j = pl.program_id(1)

    @pl.when(j == 0)
    def _():
        part_ref[...] = jnp.zeros_like(part_ref)

    x = x_ref[...].astype(jnp.float32)   # (TB, C)
    m = m_ref[...].astype(jnp.float32)   # (TB, C)

    # Numerically-stable rewrite of -log(sum(softmax(x) * m)):
    #   = log(sum(exp(x - max))) - log(sum(exp(x - max) * m))   (max cancels)
    row_max = jnp.max(x, axis=1, keepdims=True)            # (TB, 1)
    e = jnp.exp(x - row_max)                                # (TB, C)
    denom = jnp.sum(e, axis=1, keepdims=True)               # (TB, 1)
    num = jnp.sum(e * m, axis=1, keepdims=True)              # (TB, 1)
    term = jnp.log(denom) - jnp.log(num)                     # (TB, 1)

    # Ragged-tail handling: rows at or beyond the true batch size contribute 0.
    # The where() comes AFTER the logs so inf/NaN from garbage OOB rows is
    # simply not selected.
    row0 = (i * n_inner + j) * tile_b
    rows = row0 + jax.lax.broadcasted_iota(jnp.int32, (tile_b, 1), 0)
    part_ref[...] += jnp.where(rows < true_b, term, 0.0)


def _vmem_limit_bytes():
    """Scoped-VMEM limit with an explicit per-TensorCore clamp (v7x-safe)."""
    cap = 64 * 1024 * 1024
    try:
        info = pltpu.get_tpu_info()
        cap = int(getattr(info, "vmem_capacity_bytes", cap) or cap)
    except Exception:
        pass
    # Even if the query returns a per-chip number, never exceed ~48 MiB per
    # core: v7x has 64 MiB/TC and the tiles below need far less anyway.
    return max(32 * 1024 * 1024, min(cap * 3 // 4, 48 * 1024 * 1024))


def _pick_tiling(B, C, out_bytes, mask_bytes):
    """Return (tile_b, num_splits, n_inner) for the (splits, inner) grid."""
    # Cap the larger pipelined input block at ~2 MiB: measured tiling curves
    # plateau near the HBM roofline well before this, and it leaves plenty of
    # headroom (double buffers + f32 temps) inside v7x's 64 MiB/TC.
    block_budget = 2 * 1024 * 1024
    bytes_per_row = max(C * max(out_bytes, mask_bytes), 1)
    tile_b = block_budget // bytes_per_row
    tile_b = max(32, min((tile_b // 32) * 32, 1024))    # multiple of 32 (int8-safe)

    n_tiles = _cdiv(B, tile_b)
    num_splits = 2 if n_tiles >= 2 else 1               # leading (core) split axis
    n_inner = _cdiv(n_tiles, num_splits)
    # Rebalance: shrink tile_b so the padded tail is < one 32-row group instead
    # of up to ~2*tile_b-1 wasted rows of HBM traffic / exp work.
    tile_b = min(tile_b, _round_up(_cdiv(B, num_splits * n_inner), 32))
    return tile_b, num_splits, n_inner


def multi_positive_infonce(output, mask):
    """Pallas implementation of MultiPositiveInfoNCE.forward.

    output: (B, C) logits (f32/bf16/...); mask: (B, C) multi-hot positives
    (int8/bool/bf16/f32).  Returns a scalar f32 loss.
    """
    B, C = output.shape
    assert mask.shape == (B, C)

    out_bytes = jnp.dtype(output.dtype).itemsize
    mask_bytes = jnp.dtype(mask.dtype).itemsize
    tile_b, num_splits, n_inner = _pick_tiling(B, C, out_bytes, mask_bytes)
    vmem_limit = _vmem_limit_bytes()

    n_blocks = _cdiv(B, tile_b)           # number of real data tiles
    last_block = n_blocks - 1

    kernel = functools.partial(
        _infonce_kernel, true_b=B, tile_b=tile_b, n_inner=n_inner)

    def in_map(i, j):
        # Clamp phantom tiles (logical index >= n_blocks) onto the last real
        # tile; their rows are masked out in-kernel so they contribute 0.
        return (jnp.minimum(i * n_inner + j, last_block), 0)

    def build(axis0_semantics):
        return pl.pallas_call(
            kernel,
            out_shape=jax.ShapeDtypeStruct((num_splits, tile_b, 1), jnp.float32),
            grid_spec=pltpu.PrefetchScalarGridSpec(
                num_scalar_prefetch=0,
                grid=(num_splits, n_inner),
                in_specs=[
                    pl.BlockSpec((tile_b, C), in_map),
                    pl.BlockSpec((tile_b, C), in_map),
                ],
                # Block index independent of j -> the output tile stays resident
                # across the inner axis and is the accumulator (no scratch).
                out_specs=pl.BlockSpec((None, tile_b, 1), lambda i, j: (i, 0, 0)),
            ),
            compiler_params=pltpu.CompilerParams(
                dimension_semantics=(axis0_semantics, "arbitrary"),
                vmem_limit_bytes=vmem_limit,
            ),
        )

    # Prefer a genuine cross-TensorCore split of the leading axis (v7x); fall
    # back gracefully on chips / jax versions that reject CORE_PARALLEL.
    if num_splits == 1:
        choices = ["arbitrary"]
    else:
        choices = []
        if hasattr(pltpu, "CORE_PARALLEL"):
            choices.append(pltpu.CORE_PARALLEL)
        choices.append("parallel")

    partials = None
    last_err = None
    for axis0 in choices:
        try:
            partials = build(axis0)(output, mask)
            break
        except Exception as e:   # fall back to the next semantics choice
            last_err = e
    if partials is None:
        raise last_err

    # Tiny final reduction + mean in the wrapper (phantom rows contributed 0).
    return jnp.sum(partials) / jnp.float32(B)


def _reference(output, mask):
    p = jax.nn.softmax(output.astype(jnp.float32), axis=1)
    return -jnp.mean(jnp.log(jnp.sum(p * mask.astype(jnp.float32), axis=1)))


if __name__ == "__main__":
    key = jax.random.PRNGKey(0)
    B, C = 16, 128   # class dim a multiple of 128 keeps every lane busy

    k1, k2 = jax.random.split(key)
    output = jax.random.normal(k1, (B, C), dtype=jnp.float32)

    # Multi-hot 0/1 positive mask stored as int8 (halved/quartered HBM bytes;
    # the kernel upcasts in-VMEM).  Guarantee >= 1 positive per row so log()
    # is finite (same requirement as the PyTorch module).
    rand_mask = jax.random.uniform(k2, (B, C)) < 0.1
    diag = jnp.arange(C)[None, :] == (jnp.arange(B)[:, None] % C)
    mask = (rand_mask | diag).astype(jnp.int8)

    loss = multi_positive_infonce(output, mask)
    loss = jax.block_until_ready(loss)

    ref = _reference(output, mask)
    assert jnp.allclose(loss, ref, atol=1e-5, rtol=1e-5), (loss, ref)

    print("KERNEL_OK")
</pallas_src>

<mosaic_0001>
module attributes {stable_mosaic.version = 11 : i64} {
  func.func @_infonce_kernel(%arg0: i32, %arg1: i32, %arg2: memref<32x128xf32, #tpu.memory_space<vmem>>, %arg3: memref<32x128xi8, #tpu.memory_space<vmem>>, %arg4: memref<1x32x1xf32, #tpu.memory_space<vmem>>) attributes {dimension_semantics = [#tpu.dimension_semantics<arbitrary>, #tpu.dimension_semantics<arbitrary>], iteration_bounds = array<i64: 1, 1>, scalar_prefetch = 0 : i64, scratch_operands = 0 : i64, tpu.core_type = #tpu.core_type<tc>, window_params = [{transform_indices = @transform_0, window_bounds = array<i64: 32, 128>}, {transform_indices = @transform_1, window_bounds = array<i64: 32, 128>}, {transform_indices = @transform_2, window_bounds = array<i64: 1, 32, 1>}]} {
    %c0_i32 = arith.constant 0 : i32
    %0 = arith.cmpi eq, %arg1, %c0_i32 : i32
    %1 = arith.extui %0 : i1 to i32
    %c0_i32_0 = arith.constant 0 : i32
    %2 = arith.cmpi ne, %1, %c0_i32_0 : i32
    scf.if %2 {
      %cst_13 = arith.constant 0.000000e+00 : f32
      %35 = vector.broadcast %cst_13 : f32 to vector<32x1xf32>
      %c0_14 = arith.constant 0 : index
      %c0_15 = arith.constant 0 : index
      %c0_16 = arith.constant 0 : index
      %36 = vector.load %arg4[%c0_14, %c0_15, %c0_16] : memref<1x32x1xf32, #tpu.memory_space<vmem>>, vector<1x32x1xf32>
      %37 = vector.shape_cast %36 : vector<1x32x1xf32> to vector<32x1xf32>
      %38 = vector.shape_cast %35 : vector<32x1xf32> to vector<1x32x1xf32>
      tpu.vector_store %arg4[%c0_14, %c0_15, %c0_16], %38 {strides = array<i32>} : memref<1x32x1xf32, #tpu.memory_space<vmem>>, vector<1x32x1xf32>,
    } else {
    }
    %c0 = arith.constant 0 : index
    %c0_1 = arith.constant 0 : index
    %3 = vector.load %arg2[%c0, %c0_1] : memref<32x128xf32, #tpu.memory_space<vmem>>, vector<32x128xf32>
    %c0_2 = arith.constant 0 : index
    %c0_3 = arith.constant 0 : index
    %4 = vector.load %arg3[%c0_2, %c0_3] : memref<32x128xi8, #tpu.memory_space<vmem>>, vector<32x128xi8>
    %5 = arith.sitofp %4 : vector<32x128xi8> to vector<32x128xf32>
    %cst = arith.constant dense<0xFF800000> : vector<32xf32>
    %6 = vector.multi_reduction <maximumf>, %3, %cst [1] : vector<32x128xf32> to vector<32xf32>
    %7 = vector.shape_cast %6 : vector<32xf32> to vector<32x1xf32>
    %8 = vector.broadcast %7 : vector<32x1xf32> to vector<32x128xf32>
    %9 = arith.subf %3, %8 : vector<32x128xf32>
    %10 = math.exp %9 : vector<32x128xf32>
    %cst_4 = arith.constant dense<0.000000e+00> : vector<32xf32>
    %11 = vector.multi_reduction <add>, %10, %cst_4 [1] : vector<32x128xf32> to vector<32xf32>
    %12 = vector.shape_cast %11 : vector<32xf32> to vector<32x1xf32>
    %13 = arith.mulf %10, %5 : vector<32x128xf32>
    %cst_5 = arith.constant dense<0.000000e+00> : vector<32xf32>
    %14 = vector.multi_reduction <add>, %13, %cst_5 [1] : vector<32x128xf32> to vector<32xf32>
    %15 = vector.shape_cast %14 : vector<32xf32> to vector<32x1xf32>
    %16 = math.log %12 : vector<32x1xf32>
    %17 = math.log %15 : vector<32x1xf32>
    %18 = arith.subf %16, %17 : vector<32x1xf32>
    %c1_i32 = arith.constant 1 : i32
    %19 = arith.muli %arg0, %c1_i32 : i32
    %20 = arith.addi %19, %arg1 : i32
    %c32_i32 = arith.constant 32 : i32
    %21 = arith.muli %20, %c32_i32 : i32
    %22 = tpu.iota {dimensions = array<i32: 0>} : vector<32x1xi32>
    %23 = vector.broadcast %21 : i32 to vector<32x1xi32>
    %24 = arith.addi %23, %22 : vector<32x1xi32>
    %c0_6 = arith.constant 0 : index
    %c0_7 = arith.constant 0 : index
    %c0_8 = arith.constant 0 : index
    %25 = vector.load %arg4[%c0_6, %c0_7, %c0_8] : memref<1x32x1xf32, #tpu.memory_space<vmem>>, vector<1x32x1xf32>
    %26 = vector.shape_cast %25 : vector<1x32x1xf32> to vector<32x1xf32>
    %c16_i32 = arith.constant 16 : i32
    %27 = vector.broadcast %c16_i32 : i32 to vector<32x1xi32>
    %28 = arith.cmpi slt, %24, %27 : vector<32x1xi32>
    %cst_9 = arith.constant 0.000000e+00 : f32
    %29 = vector.broadcast %cst_9 : f32 to vector<32x1xf32>
    %30 = arith.select %28, %18, %29 : vector<32x1xi1>, vector<32x1xf32>
    %31 = arith.addf %26, %30 : vector<32x1xf32>
    %c0_10 = arith.constant 0 : index
    %c0_11 = arith.constant 0 : index
    %c0_12 = arith.constant 0 : index
    %32 = vector.load %arg4[%c0_10, %c0_11, %c0_12] : memref<1x32x1xf32, #tpu.memory_space<vmem>>, vector<1x32x1xf32>
    %33 = vector.shape_cast %32 : vector<1x32x1xf32> to vector<32x1xf32>
    %34 = vector.shape_cast %31 : vector<32x1xf32> to vector<1x32x1xf32>
    tpu.vector_store %arg4[%c0_10, %c0_11, %c0_12], %34 {strides = array<i32>} : memref<1x32x1xf32, #tpu.memory_space<vmem>>, vector<1x32x1xf32>,
    return
  }
  func.func @transform_0(%arg0: i32, %arg1: i32) -> (i32, i32) {
    %c1_i32 = arith.constant 1 : i32
    %0 = arith.muli %arg0, %c1_i32 : i32
    %1 = arith.addi %0, %arg1 : i32
    %c0_i32 = arith.constant 0 : i32
    %2 = arith.minsi %1, %c0_i32 : i32
    %c0_i32_0 = arith.constant 0 : i32
    %c0_i32_1 = arith.constant 0 : i32
    return %2, %c0_i32_0 : i32, i32
  }
  func.func @transform_1(%arg0: i32, %arg1: i32) -> (i32, i32) {
    %c1_i32 = arith.constant 1 : i32
    %0 = arith.muli %arg0, %c1_i32 : i32
    %1 = arith.addi %0, %arg1 : i32
    %c0_i32 = arith.constant 0 : i32
    %2 = arith.minsi %1, %c0_i32 : i32
    %c0_i32_0 = arith.constant 0 : i32
    %c0_i32_1 = arith.constant 0 : i32
    return %2, %c0_i32_0 : i32, i32
  }
  func.func @transform_2(%arg0: i32, %arg1: i32) -> (i32, i32, i32) {
    %c0_i32 = arith.constant 0 : i32
    %c0_i32_0 = arith.constant 0 : i32
    %c0_i32_1 = arith.constant 0 : i32
    return %arg0, %c0_i32, %c0_i32_0 : i32, i32, i32
  }
}

</mosaic_0001>

<bundles_post_ra>
// kernel: tpu_custom_call.1
= control target key start
LH: loop header
LB: loop body
LE: loop exit
PB: predicated region body
PF: predicated region fallthrough
CT: control target
= control target key end

     0   :  { %7 = vsyncpa [#allocation3], 0  ;;  %s360_s0 = inlined_call_operand.hbm [shape: f32[16,128], index: 0, kind: input, shape index: {}]   ;;  %s361_s1 = inlined_call_operand.hbm [shape: s8[16,128], index: 1, kind: input, shape index: {}]   ;;  %s362_s2 = inlined_call_operand.vmem [shape: f32[1,32,1], index: 2, kind: output, shape index: {}]  }
   0x1   :  { %8 = vsyncpa [#allocation5], 0 }
   0x2   :  { %19 = vsyncadd [#allocation3], 256  ;;  %s270_s9 = smov [#allocation2]   ;;  %s222_s13 = scalar_lea.hbm %s360_s0, 256 }
   0x3   :  { %s24_s10 = sshll.u32 %s270_s9, 4  ;;  %p223_p0 = scmp.ne.s32.totalorder %s360_s0, %s222_s13  ;;  %s25_s10 = int_to_ptr.vmem [resolvable:$true] %s24_s10 }
   0x4   :  { %p226_p1 = scmp.lt.u32.totalorder %s222_s13, %s360_s0 }
   0x6   :  { %p228_p2 = pnand %p226_p1, %p223_p0 }
   0x8   :  { %231 = shalt.err (!%p228_p2)
}
   0x9   :  { %s232_s18 = scalar_lea.vmem %s25_s10, 256  ;;  %s236_s19 = scalar_lea.vmem %s25_s10, 512 }
   0xa   :  { %p233_p3 = scmp.ne.s32.totalorder %s25_s10, %s232_s18  ;;  %p237_p4 = scmp.lt.s32.totalorder %s25_s10, %s25_s10 }
   0xb   :  { %p238_p5 = scmp.lt.s32.totalorder %s236_s19, %s232_s18 }
   0xd   :  { %p239_p6 = por %p238_p5, %p237_p4 }
   0xf   :  { %p240_p7 = pnand %p239_p6, %p233_p3 }
  0x11   :  { %243 = shalt.err (!%p240_p7)
}
  0x12   :  { %s271_s20 = smov 128   ;;  %s272_s21 = smov 8  }
  0x13   :  { %30 = dma.hbm_to_vmem [thread:$0]  %s360_s0, 256, %s25_s10, [#allocation3], %s271_s20, %s271_s20, %s272_s21  }
  0x14   :  { %41 = vsyncadd [#allocation5], 64  ;;  %s273_s24 = smov [#allocation4]   ;;  %s244_s28 = scalar_lea.hbm %s361_s1, 64 }
  0x15   :  { %s46_s25 = sshll.u32 %s273_s24, 4  ;;  %p245_p8 = scmp.ne.s32.totalorder %s361_s1, %s244_s28  ;;  %s47_s25 = int_to_ptr.vmem [resolvable:$true] %s46_s25 }
  0x16   :  { %p248_p9 = scmp.lt.u32.totalorder %s244_s28, %s361_s1 }
  0x18   :  { %p250_p10 = pnand %p248_p9, %p245_p8 }
  0x1a   :  { %253 = shalt.err (!%p250_p10)
}
  0x1b   :  { %s254_s5 = scalar_lea.vmem %s47_s25, 64  ;;  %s258_s0 = scalar_lea.vmem %s47_s25, 128 }
  0x1c   :  { %p255_p11 = scmp.ne.s32.totalorder %s47_s25, %s254_s5  ;;  %p259_p12 = scmp.lt.s32.totalorder %s47_s25, %s47_s25 }
  0x1d   :  { %p260_p13 = scmp.lt.s32.totalorder %s258_s0, %s254_s5 }
  0x1f   :  { %p261_p0 = por %p260_p13, %p259_p12 }
  0x21   :  { %p262_p1 = pnand %p261_p0, %p255_p11 }
  0x23   :  { %265 = shalt.err (!%p262_p1)
}
  0x24   :  { %s274_s6 = smov 32   ;;  %s275_s7 = smov 2  }
  0x25   :  { %52 = dma.hbm_to_vmem [thread:$0]  %s361_s1, 64, %s47_s25, [#allocation5], %s274_s6, %s274_s6, %s275_s7  }
  0x26   :  { %266 = dma.done.wait [#allocation3], 512  }
  0x27   :  { %267 = vsyncadd [#allocation3], 4294966784 }
  0x28   :  { %268 = dma.done.wait [#allocation5], 128  }
  0x29   :  { %269 = vsyncadd [#allocation5], 4294967168  ;;  %v80_v0 = vld [vmem:[#allocation2] sm:$0xff]  ;;  %v81_v1 = vld [vmem:[#allocation2 + $0x8] sm:$0xff]  ;;  %vm75_vm0 = vcmask 7168   ;;  %v276_v17 = vmov 0.0  }
  0x2a   :  { %96 = vmax.xlane.f32.xlu0 %v80_v0  ;;  %v200_v7 = vld [vmem:[#allocation4] sm:$0xf]   ;;  %76 = vst.msk [vmem:[%s362_s2] sm:$0xff] %vm75_vm0, %v276_v17  ;;  %78 = vst.msk [vmem:[%s362_s2 + $0x10] sm:$0xff] %vm75_vm0, %v276_v17 }
  0x2b   :  { %v201_v9 = vunpack.c.0.s8 %v200_v7  ;;  %v202_v11 = vunpack.c.1.s8 %v200_v7  ;;  %79 = vst.msk [vmem:[%s362_s2 + $0x18] sm:$0xff] %vm75_vm0, %v276_v17  ;;  %77 = vst.msk [vmem:[%s362_s2 + $0x8] sm:$0xff] %vm75_vm0, %v276_v17 }
  0x2d   :  { %v92_v10 = vcvt.s32.f32 %v201_v9  ;;  %v93_v14 = vcvt.s32.f32 %v202_v11 }
  0x2e   :  { %98 = vmax.xlane.f32.xlu0 %v81_v1 }
  0x31   :  { %v170_v18 = vld [vmem:[%s362_s2 + $0x10] sm:$0xff]  ;;  %v168_v28 = vld [vmem:[%s362_s2] sm:$0xff] }
  0x32   :  { %v171_v19 = vld [vmem:[%s362_s2 + $0x18] sm:$0xff]  ;;  %187 = vst.msk [vmem:[%s362_s2 + $0x10] sm:$0xff] %vm75_vm0, %v170_v18  ;;  %v169_v35 = vld [vmem:[%s362_s2 + $0x8] sm:$0xff] }
  0x33   :  { %188 = vst.msk [vmem:[%s362_s2 + $0x18] sm:$0xff] %vm75_vm0, %v171_v19 }
  0xb7   :  { %v97_v2 = vpop.xlane.xlu0 %96 }
  0xb8   :  { %v104_v3 = vsub.f32 %v80_v0, %v97_v2 }
  0xba   :  { %v108_v4 = vmul.f32 1.442695, %v104_v3 }
  0xbb   :  { %v99_v5 = vpop.xlane.xlu0 %98 }
  0xbc   :  { %210 = vpow2.f32 %v108_v4  ;;  %v105_v6 = vsub.f32 %v81_v1, %v99_v5 }
  0xbe   :  { %v110_v8 = vmul.f32 1.442695, %v105_v6 }
  0xc0   :  { %212 = vpow2.f32 %v110_v8 }
  0xc6   :  { %v211_v12 = vpop.eup %210 }
  0xc7   :  { %116 = vadd.xlane.f32.xlu1 %v211_v12  ;;  %v124_v13 = vmul.f32 %v211_v12, %v92_v10 }
  0xc9   :  { %128 = vadd.xlane.f32.xlu0 %v124_v13 }
  0xca   :  { %v213_v15 = vpop.eup %212 }
  0xcb   :  { %118 = vadd.xlane.f32.xlu1 %v213_v15  ;;  %v125_v16 = vmul.f32 %v213_v15, %v93_v14 }
  0xcf   :  { %130 = vadd.xlane.f32.xlu1 %v125_v16 }
 0x154   :  { %v117_v20 = vpop.xlane.xlu1 %116 }
 0x155   :  { %214 = vlog2.f32 %v117_v20 }
 0x156   :  { %v129_v21 = vpop.xlane.xlu0 %128 }
 0x157   :  { %216 = vlog2.f32 %v129_v21 }
 0x158   :  { %v119_v22 = vpop.xlane.xlu1 %118 }
 0x159   :  { %218 = vlog2.f32 %v119_v22 }
 0x15c   :  { %v131_v23 = vpop.xlane.xlu1 %130 }
 0x15d   :  { %220 = vlog2.f32 %v131_v23 }
 0x15f   :  { %v215_v24 = vpop.eup %214 }
 0x160   :  { %v137_v26 = vmul.f32 0.6931472, %v215_v24 }
 0x161   :  { %v217_v25 = vpop.eup %216 }
 0x162   :  { %v145_v27 = vmul.f32 0.6931472, %v217_v25 }
 0x163   :  { %v219_v30 = vpop.eup %218 }
 0x164   :  { %v152_v29 = vsub.f32 %v137_v26, %v145_v27  ;;  %v139_v33 = vmul.f32 0.6931472, %v219_v30 }
 0x166   :  { %v180_v31 = vadd.f32 %v168_v28, %v152_v29 }
 0x167   :  { %v221_v32 = vpop.eup %220 }
 0x168   :  { %185 = vst.msk [vmem:[%s362_s2] sm:$0xff] %vm75_vm0, %v180_v31  ;;  %v147_v34 = vmul.f32 0.6931472, %v221_v32 }
 0x16a   :  { %v153_v36 = vsub.f32 %v139_v33, %v147_v34 }
 0x16c   :  { %v181_v37 = vadd.f32 %v169_v35, %v153_v36 }
 0x16e   :  { %186 = vst.msk [vmem:[%s362_s2 + $0x8] sm:$0xff] %vm75_vm0, %v181_v37 }
 0x16f   :  { %193 = vsyncpa [#allocation3], 1 }
 0x170   :  { %194 = vsyncpa [#allocation5], 1 }

</bundles_post_ra>
